<compile_context>
chip_gen: v5e
topology: v5e:2x2
jax: 0.10.0
libtpu: 0.0.40
codegen_flags: <defaults>
</compile_context>

<pallas_src>
import numpy as np
import jax
import jax.numpy as jnp
from jax import lax
from jax.experimental import pallas as pl
from jax.experimental.pallas import tpu as pltpu


def _round_up(x, m):
    return ((x + m - 1) // m) * m


def features_linear_kernel(idx_ref, table_ref, bias_ref, out_ref, acc_ref):
    # idx_ref:   (F, TB)   int32 — global embedding indices, batch on lanes
    # table_ref: (Dp, TV)  f32/bf16 — transposed table tile, vocab on lanes
    # bias_ref:  (Dp, 1)   f32
    # out_ref:   (Dp, TB)  f32  — resident across the vocab (k) axis
    # acc_ref:   (Dp, TB)  f32  — VMEM scratch accumulator
    k = pl.program_id(1)

    @pl.when(k == 0)
    def _():
        acc_ref[...] = jnp.zeros_like(acc_ref)

    num_fields, tb = idx_ref.shape
    _, tv = table_ref.shape
    v_base = k * tv

    # Hoisted out of the per-field loop: index load (shift to tile-local
    # coordinates) and the vocab iota for this tile.
    idx = idx_ref[...] - v_base                                   # (F, TB)
    vocab_iota = lax.broadcasted_iota(jnp.int32, (tv, tb), 0)     # (TV, TB)

    # counts[v, b] = #{ f : idx[f, b] == v_base + v }   (exact; values <= F)
    counts = jnp.zeros((tv, tb), table_ref.dtype)
    for f in range(num_fields):                                   # F tiny & static
        counts = counts + (vocab_iota == idx[f:f + 1, :]).astype(table_ref.dtype)

    # sum_f table[idx[:, f]]^T  ==  table^T @ counts   -> (Dp, TB) on the MXU
    acc_ref[...] += jnp.dot(table_ref[...], counts,
                            preferred_element_type=jnp.float32)

    @pl.when(k == pl.num_programs(1) - 1)
    def _():
        out_ref[...] = (acc_ref[...] + bias_ref[...]).astype(out_ref.dtype)


def features_linear(x, field_dims, table, bias, *, tb=128, tv=512,
                    compute_dtype=jnp.float32):
    """x: (B, F) int indices, table: (V, D) f32, bias: (D,) f32 -> (B, D) f32.

    compute_dtype: set to jnp.bfloat16 on v6e/v7x to halve table DMA bytes and
    counts vreg pressure (counts are small integers so bf16 counts are exact;
    the table cast is a precision trade-off). f32 keeps exact parity here.
    """
    B, F = x.shape
    V, D = table.shape
    assert V == int(sum(field_dims))
    assert tb % 128 == 0 and tv % 128 == 0

    offsets = jnp.asarray(
        np.array((0, *np.cumsum(field_dims)[:-1]), dtype=np.int32))

    # Fold offsets into the indices (plain XLA) and put batch on the lane axis.
    idx_t = (x.astype(jnp.int32) + offsets[None, :]).T            # (F, B)

    # Pad batch / vocab to tile multiples and pad the embedding dim to a
    # sublane multiple so every block is (8,128)-aligned (unmasked stores).
    # Padded batch columns are sliced off below; padded vocab columns are
    # never matched by any index; padded embedding rows hold zeros.
    bp = _round_up(B, tb)
    vp = _round_up(V, tv)
    dp = _round_up(max(D, 1), 8)
    if bp != B:
        idx_t = jnp.pad(idx_t, ((0, 0), (0, bp - B)))
    table_t = table.astype(compute_dtype).T                       # (D, V), lane-dense
    table_t = jnp.pad(table_t, ((0, dp - D), (0, vp - V)))        # (Dp, Vp)
    bias2 = jnp.pad(bias.astype(jnp.float32), (0, dp - D)).reshape(dp, 1)

    grid = (bp // tb, vp // tv)
    tbytes = jnp.dtype(compute_dtype).itemsize

    cost = pl.CostEstimate(
        flops=2 * bp * vp * dp + bp * vp * F,
        transcendentals=0,
        bytes_accessed=(grid[0] * vp * dp * tbytes
                        + bp * F * 4 + bp * dp * 4),
    )

    # Per-tile VMEM: double-buffered blocks + in-kernel (TV,TB) temporaries
    # + accumulator; generous headroom, capped so it is safe on v7x (64 MiB).
    est = (2 * (dp * tv * tbytes + F * tb * 4 + dp * tb * 4)
           + 12 * tv * tb * 4 + 2 * dp * tb * 4)
    vmem_limit = int(min(32 * 1024 * 1024, max(8 * 1024 * 1024, 2 * est)))

    out_t = pl.pallas_call(
        features_linear_kernel,
        out_shape=jax.ShapeDtypeStruct((dp, bp), jnp.float32),
        grid_spec=pltpu.PrefetchScalarGridSpec(
            num_scalar_prefetch=0,
            grid=grid,
            in_specs=[
                pl.BlockSpec((F, tb), lambda b, k: (0, b)),    # indices (F, TB)
                pl.BlockSpec((dp, tv), lambda b, k: (0, k)),   # table^T (Dp, TV)
                pl.BlockSpec((dp, 1), lambda b, k: (0, 0)),    # bias (Dp, 1)
            ],
            out_specs=pl.BlockSpec((dp, tb), lambda b, k: (0, b)),
            scratch_shapes=[pltpu.VMEM((dp, tb), jnp.float32)],
        ),
        compiler_params=pltpu.CompilerParams(
            dimension_semantics=("parallel", "arbitrary"),
            vmem_limit_bytes=vmem_limit,
        ),
        cost_estimate=cost,
    )(idx_t, table_t, bias2)

    return out_t[:D, :B].T                                         # (B, D)


if __name__ == "__main__":
    # Small, deterministic setup consistent with FeaturesLinear.__init__,
    # sized so the tiled grid (2 batch tiles x 2 vocab tiles) is exercised.
    field_dims = (30, 50, 60, 116)     # sum = 256 -> vocab V
    output_dim = 1
    B = 256
    F = len(field_dims)
    V = int(sum(field_dims))

    key = jax.random.PRNGKey(0)
    k_table, k_x = jax.random.split(key)

    # torch.nn.Embedding default init ~ N(0, 1); bias initialized to zeros.
    table = jax.random.normal(k_table, (V, output_dim), dtype=jnp.float32)
    bias = jnp.zeros((output_dim,), dtype=jnp.float32)

    # Per-field categorical indices: x[:, f] in [0, field_dims[f])
    keys = jax.random.split(k_x, F)
    cols = [
        jax.random.randint(keys[f], (B, 1), 0, field_dims[f], dtype=jnp.int32)
        for f in range(F)
    ]
    x = jnp.concatenate(cols, axis=1)  # (B, F) int32

    out = features_linear(x, field_dims, table, bias, tb=128, tv=128)
    out = jax.block_until_ready(out)

    # Pure-JAX reference (embedding gather + field-sum + bias).
    offsets_np = np.array((0, *np.cumsum(field_dims)[:-1]), dtype=np.int32)
    idx_full = x + jnp.asarray(offsets_np)[None, :]
    ref = jnp.take(table, idx_full, axis=0).sum(axis=1) + bias[None, :]

    assert out.shape == (B, output_dim), out.shape
    np.testing.assert_allclose(np.asarray(out), np.asarray(ref),
                               rtol=1e-5, atol=1e-5)

    print("KERNEL_OK")
</pallas_src>

<mosaic_0001>
module attributes {stable_mosaic.version = 11 : i64} {
  func.func @features_linear_kernel(%arg0: i32, %arg1: i32, %arg2: memref<4x128xi32, #tpu.memory_space<vmem>>, %arg3: memref<8x128xf32, #tpu.memory_space<vmem>>, %arg4: memref<8x1xf32, #tpu.memory_space<vmem>>, %arg5: memref<8x128xf32, #tpu.memory_space<vmem>>, %arg6: memref<8x128xf32, #tpu.memory_space<vmem>>) attributes {dimension_semantics = [#tpu.dimension_semantics<parallel>, #tpu.dimension_semantics<arbitrary>], iteration_bounds = array<i64: 2, 2>, scalar_prefetch = 0 : i64, scratch_operands = 1 : i64, tpu.core_type = #tpu.core_type<tc>, window_params = [{transform_indices = @transform_0, window_bounds = array<i64: 4, 128>}, {transform_indices = @transform_1, window_bounds = array<i64: 8, 128>}, {pipeline_mode = #tpu.pipeline_mode<synchronous>, transform_indices = @transform_2, window_bounds = array<i64: 8, 1>}, {transform_indices = @transform_3, window_bounds = array<i64: 8, 128>}]} {
    %c0_i32 = arith.constant 0 : i32
    %0 = arith.cmpi eq, %arg1, %c0_i32 : i32
    %1 = arith.extui %0 : i1 to i32
    %c0_i32_0 = arith.constant 0 : i32
    %2 = arith.cmpi ne, %1, %c0_i32_0 : i32
    scf.if %2 {
      %cst_10 = arith.constant 0.000000e+00 : f32
      %41 = vector.broadcast %cst_10 : f32 to vector<8x128xf32>
      %c0_11 = arith.constant 0 : index
      %c0_12 = arith.constant 0 : index
      %42 = vector.load %arg6[%c0_11, %c0_12] : memref<8x128xf32, #tpu.memory_space<vmem>>, vector<8x128xf32>
      tpu.vector_store %arg6[%c0_11, %c0_12], %41 {strides = array<i32>} : memref<8x128xf32, #tpu.memory_space<vmem>>, vector<8x128xf32>,
    } else {
    }
    %c128_i32 = arith.constant 128 : i32
    %3 = arith.muli %arg1, %c128_i32 : i32
    %c0 = arith.constant 0 : index
    %c0_1 = arith.constant 0 : index
    %4 = vector.load %arg2[%c0, %c0_1] : memref<4x128xi32, #tpu.memory_space<vmem>>, vector<4x128xi32>
    %5 = vector.broadcast %3 : i32 to vector<4x128xi32>
    %6 = arith.subi %4, %5 : vector<4x128xi32>
    %7 = tpu.iota {dimensions = array<i32: 0>} : vector<128x128xi32>
    %cst = arith.constant 0.000000e+00 : f32
    %8 = vector.broadcast %cst : f32 to vector<128x128xf32>
    %9 = vector.extract_strided_slice %6 {offsets = [0, 0], sizes = [1, 128], strides = [1, 1]} : vector<4x128xi32> to vector<1x128xi32>
    %10 = vector.broadcast %9 : vector<1x128xi32> to vector<128x128xi32>
    %11 = arith.cmpi eq, %7, %10 : vector<128x128xi32>
    %12 = arith.extui %11 : vector<128x128xi1> to vector<128x128xi32>
    %13 = arith.sitofp %12 : vector<128x128xi32> to vector<128x128xf32>
    %14 = arith.addf %8, %13 : vector<128x128xf32>
    %15 = vector.extract_strided_slice %6 {offsets = [1, 0], sizes = [1, 128], strides = [1, 1]} : vector<4x128xi32> to vector<1x128xi32>
    %16 = vector.broadcast %15 : vector<1x128xi32> to vector<128x128xi32>
    %17 = arith.cmpi eq, %7, %16 : vector<128x128xi32>
    %18 = arith.extui %17 : vector<128x128xi1> to vector<128x128xi32>
    %19 = arith.sitofp %18 : vector<128x128xi32> to vector<128x128xf32>
    %20 = arith.addf %14, %19 : vector<128x128xf32>
    %21 = vector.extract_strided_slice %6 {offsets = [2, 0], sizes = [1, 128], strides = [1, 1]} : vector<4x128xi32> to vector<1x128xi32>
    %22 = vector.broadcast %21 : vector<1x128xi32> to vector<128x128xi32>
    %23 = arith.cmpi eq, %7, %22 : vector<128x128xi32>
    %24 = arith.extui %23 : vector<128x128xi1> to vector<128x128xi32>
    %25 = arith.sitofp %24 : vector<128x128xi32> to vector<128x128xf32>
    %26 = arith.addf %20, %25 : vector<128x128xf32>
    %27 = vector.extract_strided_slice %6 {offsets = [3, 0], sizes = [1, 128], strides = [1, 1]} : vector<4x128xi32> to vector<1x128xi32>
    %28 = vector.broadcast %27 : vector<1x128xi32> to vector<128x128xi32>
    %29 = arith.cmpi eq, %7, %28 : vector<128x128xi32>
    %30 = arith.extui %29 : vector<128x128xi1> to vector<128x128xi32>
    %31 = arith.sitofp %30 : vector<128x128xi32> to vector<128x128xf32>
    %32 = arith.addf %26, %31 : vector<128x128xf32>
    %c0_2 = arith.constant 0 : index
    %c0_3 = arith.constant 0 : index
    %33 = vector.load %arg6[%c0_2, %c0_3] : memref<8x128xf32, #tpu.memory_space<vmem>>, vector<8x128xf32>
    %c0_4 = arith.constant 0 : index
    %c0_5 = arith.constant 0 : index
    %34 = vector.load %arg3[%c0_4, %c0_5] : memref<8x128xf32, #tpu.memory_space<vmem>>, vector<8x128xf32>
    %cst_6 = arith.constant dense<0.000000e+00> : vector<8x128xf32>
    %35 = tpu.matmul %34, %32, %cst_6 {dimension_numbers = #tpu.dot_dimension_numbers<[1], [0], [0], [1], [0, 0, 1, 1], [], []>} : vector<8x128xf32>, vector<128x128xf32>, vector<8x128xf32> -> vector<8x128xf32>
    %36 = arith.addf %33, %35 : vector<8x128xf32>
    %c0_7 = arith.constant 0 : index
    %c0_8 = arith.constant 0 : index
    %37 = vector.load %arg6[%c0_7, %c0_8] : memref<8x128xf32, #tpu.memory_space<vmem>>, vector<8x128xf32>
    tpu.vector_store %arg6[%c0_7, %c0_8], %36 {strides = array<i32>} : memref<8x128xf32, #tpu.memory_space<vmem>>, vector<8x128xf32>,
    %c1_i32 = arith.constant 1 : i32
    %38 = arith.cmpi eq, %arg1, %c1_i32 : i32
    %39 = arith.extui %38 : i1 to i32
    %c0_i32_9 = arith.constant 0 : i32
    %40 = arith.cmpi ne, %39, %c0_i32_9 : i32
    scf.if %40 {
      %c0_10 = arith.constant 0 : index
      %c0_11 = arith.constant 0 : index
      %41 = vector.load %arg6[%c0_10, %c0_11] : memref<8x128xf32, #tpu.memory_space<vmem>>, vector<8x128xf32>
      %c0_12 = arith.constant 0 : index
      %c0_13 = arith.constant 0 : index
      %42 = vector.load %arg4[%c0_12, %c0_13] : memref<8x1xf32, #tpu.memory_space<vmem>>, vector<8x1xf32>
      %43 = vector.broadcast %42 : vector<8x1xf32> to vector<8x128xf32>
      %44 = arith.addf %41, %43 : vector<8x128xf32>
      %c0_14 = arith.constant 0 : index
      %c0_15 = arith.constant 0 : index
      %45 = vector.load %arg5[%c0_14, %c0_15] : memref<8x128xf32, #tpu.memory_space<vmem>>, vector<8x128xf32>
      tpu.vector_store %arg5[%c0_14, %c0_15], %44 {strides = array<i32>} : memref<8x128xf32, #tpu.memory_space<vmem>>, vector<8x128xf32>,
    } else {
    }
    return
  }
  func.func @transform_0(%arg0: i32, %arg1: i32) -> (i32, i32) {
    %c0_i32 = arith.constant 0 : i32
    %c0_i32_0 = arith.constant 0 : i32
    return %c0_i32, %arg0 : i32, i32
  }
  func.func @transform_1(%arg0: i32, %arg1: i32) -> (i32, i32) {
    %c0_i32 = arith.constant 0 : i32
    %c0_i32_0 = arith.constant 0 : i32
    return %c0_i32, %arg1 : i32, i32
  }
  func.func @transform_2(%arg0: i32, %arg1: i32) -> (i32, i32) {
    %c0_i32 = arith.constant 0 : i32
    %c0_i32_0 = arith.constant 0 : i32
    %c0_i32_1 = arith.constant 0 : i32
    return %c0_i32, %c0_i32_0 : i32, i32
  }
  func.func @transform_3(%arg0: i32, %arg1: i32) -> (i32, i32) {
    %c0_i32 = arith.constant 0 : i32
    %c0_i32_0 = arith.constant 0 : i32
    return %c0_i32, %arg0 : i32, i32
  }
}

</mosaic_0001>

<bundles_post_ra>
// kernel: tpu_custom_call.1
= control target key start
LH: loop header
LB: loop body
LE: loop exit
PB: predicated region body
PF: predicated region fallthrough
CT: control target
= control target key end

     0   :  { %8 = vsyncpa [#allocation4], 0  ;;  %s1362_s0 = inlined_call_operand.vmem [shape: s32[4,256], index: 0, kind: input, shape index: {}]   ;;  %s1363_s1 = inlined_call_operand.hbm [shape: f32[8,256], index: 1, kind: input, shape index: {}]   ;;  %s1364_s2 = inlined_call_operand.vmem [shape: f32[8,1], index: 2, kind: input, shape index: {}]   ;;  %s1365_s3 = inlined_call_operand.hbm [shape: f32[8,256], index: 3, kind: output, shape index: {}]  }
   0x1   :  { %10 = vsyncpa [#allocation4 + $0x1], 0 }
   0x2   :  { %11 = vsyncpa [#allocation5], 0 }
   0x3   :  { %13 = vsyncpa [#allocation5 + $0x1], 0  ;;  %s1013_s12 = smov 0   ;;  %s1015_s13 = smov 0  }
   0x4   :  { %s1017_s14 = smov 0   ;;  %s1019_s15 = smov 0  }
   0x5   :  { %s1021_s16 = smov 0   ;;  %s1023_s17 = smov 0  }
   0x6   :  { %s1025_s18 = smov 0   ;;  %s1027_s19 = smov 0  }
   0x7   :  { %s1029_s20 = smov 0   ;;  %s1031_s21 = smov 0  }
   0x8   :  { %s1033_s22 = smov 0  }
   0x9 LB: > { %1369 = sst [smem:[#allocation9_spill]] %s984_s21  ;;  %s649_s23 = sadd.s32 4294967295, %s988_s22   ;;  %s988_s22 = sphi %s1033_s22, %s19_s22   ;;  %s984_s21 = sphi %s1031_s21, %s1378_s21   ;;  %s980_s20 = sphi %s1029_s20, %s1386_s20   ;;  %s976_s19 = sphi %s1027_s19, %s1376_s19   ;;  %s972_s18 = sphi %s1025_s18, %s1385_s18   ;;  %s968_s17 = sphi %s1023_s17, %s1384_s17   ;;  %s964_s16 = sphi %s1021_s16, %s1383_s16   ;;  %s960_s15 = sphi %s1019_s15, %s1382_s15   ;;  %s956_s14 = sphi %s1017_s14, %s1381_s14   ;;  %s952_s13 = sphi %s1015_s13, %s1380_s13   ;;  %s948_s12 = sphi %s1013_s12, %s1379_s12  }
   0xa   : > { %s650_s24 = sadd.s32 4294967294, %s988_s22   ;;  %s28_s25 = sadd.s32 1, %s980_s20 }
   0xb   : > { %s31_s26 = sadd.s32 1, %s984_s21  ;;  %p29_p0 = scmp.ge.s32.totalorder %s28_s25, 2 }
   0xc   : > { %s64_s27 = sadd.s32 1, %s968_s17  ;;  %p71_p1 = scmp.ne.s32.totalorder %s968_s17, %s964_s16 }
   0xd   : > { %p72_p2 = scmp.eq.s32.totalorder %s988_s22, 0  ;;  %s1388_s25 = smov (%p29_p0, %s28_s25), 0 }
   0xe   : > { %1370 = sst [smem:[#allocation10_spill]] %s1388_s25  ;;  %s1390_s26 = smov (!%p29_p0, %s31_s26), %s984_s21 }
   0xf   : > { %s61_s28 = ssub.s32 %s980_s20, %s1388_s25  ;;  %p1079_p3 = por %p72_p2, %p71_p1 }
  0x10   : > { %p33_p4 = scmp.ge.s32.totalorder %s1390_s26, 2  ;;  %p62_p5 = scmp.eq.s32.totalorder %s61_s28, 0 }
  0x11   : > { %p77_p6 = scmp.ne.s32.totalorder %s964_s16, %s960_s15  ;;  %p78_p7 = scmp.eq.s32.totalorder %s649_s23, 0 }
  0x12   : > { %s1392_s26 = smov (%p33_p4, %s1390_s26), 0  ;;  %s111_s6 = sadd.s32 1, %s956_s14 }
  0x13   : > { %1372 = sst [smem:[#allocation11_spill]] %s1392_s26  ;;  %p1089_p8 = por %p78_p7, %p77_p6 }
  0x14   : > { %s1087_s30 = scalar_select %p62_p5, %s968_s17, %s64_s27  }
  0x15   : > { %s108_s5 = ssub.s32 %s984_s21, %s1392_s26  ;;  %p121_p10 = scmp.ne.s32.totalorder %s956_s14, %s952_s13 }
  0x16   : > { %p109_p9 = scmp.eq.s32.totalorder %s108_s5, 0  ;;  %p122_p11 = scmp.eq.s32.totalorder %s649_s23, 3 }
  0x17   : > { %p127_p13 = scmp.ne.s32.totalorder %s952_s13, %s948_s12  ;;  %p128_p0 = scmp.eq.s32.totalorder %s650_s24, 3 }
  0x18   : > { %s1099_s7 = scalar_select %p109_p9, %s956_s14, %s111_s6  }
  0x19   : > { %p1101_p12 = por %p122_p11, %p121_p10  ;;  %p742_p1 = scmp.lt.s32.totalorder %s988_s22, 4 }
  0x1a   : > { %s158_s9 = sand.u32 1, %s968_s17   ;;  %p1109_p2 = por %p128_p0, %p127_p13 }
  0x1b   : > { %s653_s11 = sshll.u32 %s158_s9, 3  ;;  %s654_s15 = sshll.u32 %s980_s20, 3 }
  0x1c   : > { %s166_s28 = scalar_lea.hbm %s1363_s1, %s654_s15  ;;  %s162_s6 = scalar_lea.vmem [#allocation3], %s653_s11 }
  0x1d   : > { %s168_s5 = sshll.u32 %s166_s28, 4  ;;  %s170_s26 = sshll.u32 %s162_s6, 4  ;;  %s169_s5 = int_to_ptr.hbm [resolvable:$true] %s168_s5  ;;  %s171_s26 = int_to_ptr.vmem [resolvable:$true] %s170_s26 }
  0x1e   : > { %p735_p4 = pnand %p742_p1, %p1079_p3  ;;  %p655_p5 = scmp.ge.s32.totalorder %s988_s22, 1 }
  0x1f   : > { %p175_p6 = scmp.lt.s32.totalorder %s988_s22, 5  ;;  %s159_s24 = scalar_lea.sflag [#allocation4], %s158_s9 }
  0x20   : > { %737 = dma.hbm_to_vmem [thread:$0]  (!%p735_p4), %s169_s5, 128, %s171_s26, %s159_s24  }
  0x21   : > { %p176_p7 = pnand %p655_p5, %p175_p6 }
  0x22   : > { %s181_s25 = sand.u32 (!%p176_p7), 1, %s964_s16  }
  0x23   : > { %179 = sbr.rel (%p176_p7) target bundleno = 373 (0x175), region = 32  ;;  %s1122_s21 = sshll.u32 (!%p176_p7), %s181_s25, 3 }
  0x24   : > { %s182_s15 = scalar_lea.sflag (!%p176_p7), [#allocation4], %s181_s25  ;;  %s185_s23 = scalar_lea.vmem (!%p176_p7), [#allocation3], %s1122_s21 }
  0x28   : > { %939 = dma.done.wait (%p1089_p8), %s182_s15, 128  }
  0x29   : > { %941 = vsyncadd (%p1089_p8), %s182_s15, 4294967168  ;;  %s210_s26 = sand.u32 1, %s952_s13   ;;  %p213_p3 = scmp.lt.s32.totalorder %s976_s19, 1 }
  0x2a   : > { %s1133_s29 = sshll.u32 %s210_s26, 3  ;;  %p659_p9 = scmp.ne.s32.totalorder %s972_s18, 0 }
  0x2b   : > { %s214_s9 = scalar_select %p213_p3, %s976_s19, 1 }
  0x2c   : > { %s212_s5 = scalar_lea.vmem [#allocation6], %s1133_s29  ;;  %220 = sbr.rel (%p659_p9) target bundleno = 51 (0x33), region = 40 }
  0x2d   : > { %s658_s11 = sshll.u32 %s214_s9, 2 }
  0x2e   : > { %s216_s28 = scalar_lea.vmem %s1362_s0, %s658_s11 }
  0x31   : > { %v990_v0 = vmov 0.0  }
  0x32   : > { %221 = vst [vmem:[#allocation2] sm:$0xff] %v990_v0 }
  0x33 PF: > { %s660_s4 = sshll.u32 %s972_s18, 7  ;;  %v223_v1 = vld [vmem:[%s216_s28] sm:$0xf]  ;;  %v226_v2 = vlaneseq  ;;  %v991_v15 = vmov 0.0   ;;  %p725_p8 = scmp.ne.s32.totalorder %s972_s18, 1 }
  0x34   : > { %v224_v3 = vstv %s660_s4 }
  0x35   : > { %v225_v4 = vsub.s32 %v223_v1, %v224_v3  ;;  %v1142_v5 = vshrl.u32 %v226_v2, 7 }
  0x37   : > { %v242_v6 = vadd.s32 120, %v1142_v5  ;;  %v1145_v7 = vperm.slane %v225_v4, 0  ;;  %v1147_v8 = vperm.slane %v225_v4, 1  ;;  %v1149_v9 = vperm.slane %v225_v4, 2 }
  0x38   : > { %v1151_v10 = vperm.slane %v225_v4, 3  ;;  %v241_v11 = vadd.s32 112, %v1142_v5  ;;  %v240_v12 = vadd.s32 104, %v1142_v5  ;;  %v239_v13 = vadd.s32 96, %v1142_v5 }
  0x39   : > { %vm259_vm0 = vcmp.eq.s32.totalorder %v242_v6, %v1145_v7  ;;  %vm324_vm1 = vcmp.eq.s32.totalorder %v242_v6, %v1147_v8  ;;  %vm389_vm2 = vcmp.eq.s32.totalorder %v242_v6, %v1149_v9  ;;  %v238_v14 = vadd.s32 88, %v1142_v5 }
  0x3a   : > { %v676_v16 = vsel %vm259_vm0, 1.0, %v991_v15  ;;  %v692_v17 = vsel %vm324_vm1, 1.0, %v991_v15  ;;  %v708_v18 = vsel %vm389_vm2, 1.0, %v991_v15  ;;  %vm454_vm3 = vcmp.eq.s32.totalorder %v242_v6, %v1151_v10 }
  0x3b   : > { %v372_v19 = vadd.f32 %v692_v17, %v676_v16  ;;  %v724_v20 = vsel %vm454_vm3, 1.0, %v991_v15  ;;  %vm258_vm4 = vcmp.eq.s32.totalorder %v241_v11, %v1145_v7  ;;  %vm323_vm5 = vcmp.eq.s32.totalorder %v241_v11, %v1147_v8 }
  0x3c   : > { %v675_v21 = vsel %vm258_vm4, 1.0, %v991_v15  ;;  %v691_v22 = vsel %vm323_vm5, 1.0, %v991_v15  ;;  %vm388_vm6 = vcmp.eq.s32.totalorder %v241_v11, %v1149_v9  ;;  %vm453_vm7 = vcmp.eq.s32.totalorder %v241_v11, %v1151_v10 }
  0x3d   : > { %v437_v23 = vadd.f32 %v708_v18, %v372_v19  ;;  %v371_v24 = vadd.f32 %v691_v22, %v675_v21  ;;  %v707_v25 = vsel %vm388_vm6, 1.0, %v991_v15  ;;  %v723_v26 = vsel %vm453_vm7, 1.0, %v991_v15 }
  0x3e   : > { %vm257_vm8 = vcmp.eq.s32.totalorder %v240_v12, %v1145_v7  ;;  %vm322_vm9 = vcmp.eq.s32.totalorder %v240_v12, %v1147_v8  ;;  %vm387_vm10 = vcmp.eq.s32.totalorder %v240_v12, %v1149_v9  ;;  %vm452_vm11 = vcmp.eq.s32.totalorder %v240_v12, %v1151_v10 }
  0x3f   : > { %v502_v27 = vadd.f32 %v724_v20, %v437_v23  ;;  %v436_v28 = vadd.f32 %v707_v25, %v371_v24  ;;  %v674_v29 = vsel %vm257_vm8, 1.0, %v991_v15  ;;  %v690_v30 = vsel %vm322_vm9, 1.0, %v991_v15 }
  0x40   : > { %v370_v31 = vadd.f32 %v690_v30, %v674_v29  ;;  %v706_v32 = vsel %vm387_vm10, 1.0, %v991_v15  ;;  %v722_v33 = vsel %vm452_vm11, 1.0, %v991_v15  ;;  %vm256_vm12 = vcmp.eq.s32.totalorder %v239_v13, %v1145_v7 }
  0x41   : > { %505 = vmatpush.msra.mxu0 %v502_v27  ;;  %v501_v34 = vadd.f32 %v723_v26, %v436_v28  ;;  %v673_v35 = vsel %vm256_vm12, 1.0, %v991_v15  ;;  %vm321_vm13 = vcmp.eq.s32.totalorder %v239_v13, %v1147_v8  ;;  %vm386_vm14 = vcmp.eq.s32.totalorder %v239_v13, %v1149_v9 }
  0x42   : > { %v435_v36 = vadd.f32 %v706_v32, %v370_v31  ;;  %v689_v37 = vsel %vm321_vm13, 1.0, %v991_v15  ;;  %v705_v38 = vsel %vm386_vm14, 1.0, %v991_v15  ;;  %vm451_vm15 = vcmp.eq.s32.totalorder %v239_v13, %v1151_v10 }
  0x43   : > { %506 = vmatpush.msra.mxu0 %v501_v34  ;;  %v369_v39 = vadd.f32 %v689_v37, %v673_v35  ;;  %v721_v40 = vsel %vm451_vm15, 1.0, %v991_v15  ;;  %vm255_vm0 = vcmp.eq.s32.totalorder %v238_v14, %v1145_v7  ;;  %vm320_vm1 = vcmp.eq.s32.totalorder %v238_v14, %v1147_v8 }
  0x44   : > { %v500_v41 = vadd.f32 %v722_v33, %v435_v36  ;;  %v672_v42 = vsel %vm255_vm0, 1.0, %v991_v15  ;;  %v688_v43 = vsel %vm320_vm1, 1.0, %v991_v15  ;;  %vm385_vm2 = vcmp.eq.s32.totalorder %v238_v14, %v1149_v9 }
  0x45   : > { %v434_v44 = vadd.f32 %v705_v38, %v369_v39  ;;  %v368_v45 = vadd.f32 %v688_v43, %v672_v42  ;;  %v704_v46 = vsel %vm385_vm2, 1.0, %v991_v15  ;;  %vm450_vm3 = vcmp.eq.s32.totalorder %v238_v14, %v1151_v10 }
  0x46   : > { %507 = vmatpush.msra.mxu0 %v500_v41  ;;  %v720_v47 = vsel %vm450_vm3, 1.0, %v991_v15  ;;  %v237_v48 = vadd.s32 80, %v1142_v5  ;;  %v236_v49 = vadd.s32 72, %v1142_v5  ;;  %v235_v50 = vadd.s32 64, %v1142_v5 }
  0x47   : > { %v499_v51 = vadd.f32 %v721_v40, %v434_v44  ;;  %v433_v52 = vadd.f32 %v704_v46, %v368_v45  ;;  %v234_v53 = vadd.s32 56, %v1142_v5  ;;  %v233_v54 = vadd.s32 48, %v1142_v5 }
  0x48   : > { %vm254_vm4 = vcmp.eq.s32.totalorder %v237_v48, %v1145_v7  ;;  %vm319_vm5 = vcmp.eq.s32.totalorder %v237_v48, %v1147_v8  ;;  %vm384_vm6 = vcmp.eq.s32.totalorder %v237_v48, %v1149_v9  ;;  %vm449_vm7 = vcmp.eq.s32.totalorder %v237_v48, %v1151_v10 }
  0x49   : > { %508 = vmatpush.msra.mxu0 %v499_v51  ;;  %v498_v55 = vadd.f32 %v720_v47, %v433_v52  ;;  %v671_v56 = vsel %vm254_vm4, 1.0, %v991_v15  ;;  %v687_v57 = vsel %vm319_vm5, 1.0, %v991_v15  ;;  %v703_v58 = vsel %vm384_vm6, 1.0, %v991_v15 }
  0x4a   : > { %v367_v59 = vadd.f32 %v687_v57, %v671_v56  ;;  %v719_v60 = vsel %vm449_vm7, 1.0, %v991_v15  ;;  %vm253_vm8 = vcmp.eq.s32.totalorder %v236_v49, %v1145_v7  ;;  %vm318_vm9 = vcmp.eq.s32.totalorder %v236_v49, %v1147_v8 }
  0x4b   : > { %509 = vmatpush.msra.mxu0 %v498_v55  ;;  %v670_v61 = vsel %vm253_vm8, 1.0, %v991_v15  ;;  %v686_v62 = vsel %vm318_vm9, 1.0, %v991_v15  ;;  %vm383_vm10 = vcmp.eq.s32.totalorder %v236_v49, %v1149_v9  ;;  %vm448_vm11 = vcmp.eq.s32.totalorder %v236_v49, %v1151_v10 }
  0x4c   : > { %v432_v63 = vadd.f32 %v703_v58, %v367_v59  ;;  %v366_v0 = vadd.f32 %v686_v62, %v670_v61  ;;  %v702_v1 = vsel %vm383_vm10, 1.0, %v991_v15  ;;  %v718_v2 = vsel %vm448_vm11, 1.0, %v991_v15 }
  0x4d   : > { %vm252_vm12 = vcmp.eq.s32.totalorder %v235_v50, %v1145_v7  ;;  %vm317_vm13 = vcmp.eq.s32.totalorder %v235_v50, %v1147_v8  ;;  %vm382_vm14 = vcmp.eq.s32.totalorder %v235_v50, %v1149_v9  ;;  %vm447_vm15 = vcmp.eq.s32.totalorder %v235_v50, %v1151_v10 }
  0x4e   : > { %v497_v3 = vadd.f32 %v719_v60, %v432_v63  ;;  %v431_v4 = vadd.f32 %v702_v1, %v366_v0  ;;  %v669_v6 = vsel %vm252_vm12, 1.0, %v991_v15  ;;  %v685_v11 = vsel %vm317_vm13, 1.0, %v991_v15 }
  0x4f   : > { %v365_v12 = vadd.f32 %v685_v11, %v669_v6  ;;  %v701_v13 = vsel %vm382_vm14, 1.0, %v991_v15  ;;  %v717_v14 = vsel %vm447_vm15, 1.0, %v991_v15  ;;  %vm251_vm0 = vcmp.eq.s32.totalorder %v234_v53, %v1145_v7 }
  0x50   : > { %510 = vmatpush.msra.mxu0 %v497_v3  ;;  %v496_v16 = vadd.f32 %v718_v2, %v431_v4  ;;  %v668_v17 = vsel %vm251_vm0, 1.0, %v991_v15  ;;  %vm316_vm1 = vcmp.eq.s32.totalorder %v234_v53, %v1147_v8  ;;  %vm381_vm2 = vcmp.eq.s32.totalorder %v234_v53, %v1149_v9 }
  0x51   : > { %v430_v18 = vadd.f32 %v701_v13, %v365_v12  ;;  %v684_v19 = vsel %vm316_vm1, 1.0, %v991_v15  ;;  %v700_v20 = vsel %vm381_vm2, 1.0, %v991_v15  ;;  %vm446_vm3 = vcmp.eq.s32.totalorder %v234_v53, %v1151_v10 }
  0x52   : > { %511 = vmatpush.msra.mxu0 %v496_v16  ;;  %v364_v21 = vadd.f32 %v684_v19, %v668_v17  ;;  %v716_v22 = vsel %vm446_vm3, 1.0, %v991_v15  ;;  %vm250_vm4 = vcmp.eq.s32.totalorder %v233_v54, %v1145_v7  ;;  %vm315_vm5 = vcmp.eq.s32.totalorder %v233_v54, %v1147_v8 }
  0x53   : > { %v495_v23 = vadd.f32 %v717_v14, %v430_v18  ;;  %v667_v24 = vsel %vm250_vm4, 1.0, %v991_v15  ;;  %v683_v25 = vsel %vm315_vm5, 1.0, %v991_v15  ;;  %vm380_vm6 = vcmp.eq.s32.totalorder %v233_v54, %v1149_v9 }
  0x54   : > { %v429_v26 = vadd.f32 %v700_v20, %v364_v21  ;;  %v363_v27 = vadd.f32 %v683_v25, %v667_v24  ;;  %v699_v28 = vsel %vm380_vm6, 1.0, %v991_v15  ;;  %vm445_vm7 = vcmp.eq.s32.totalorder %v233_v54, %v1151_v10  ;;  %v503_v20 = vld [vmem:[#allocation2] sm:$0xff] }
  0x55   : > { %512 = vmatpush.msra.mxu0 %v495_v23  ;;  %v715_v29 = vsel %vm445_vm7, 1.0, %v991_v15  ;;  %v232_v30 = vadd.s32 40, %v1142_v5  ;;  %v231_v31 = vadd.s32 32, %v1142_v5  ;;  %v230_v32 = vadd.s32 24, %v1142_v5 }
  0x56   : > { %v494_v33 = vadd.f32 %v716_v22, %v429_v26  ;;  %v428_v34 = vadd.f32 %v699_v28, %v363_v27  ;;  %v229_v35 = vadd.s32 16, %v1142_v5  ;;  %v228_v36 = vadd.s32 8, %v1142_v5 }
  0x57   : > { %vm249_vm8 = vcmp.eq.s32.totalorder %v232_v30, %v1145_v7  ;;  %vm314_vm9 = vcmp.eq.s32.totalorder %v232_v30, %v1147_v8  ;;  %vm379_vm10 = vcmp.eq.s32.totalorder %v232_v30, %v1149_v9  ;;  %vm444_vm11 = vcmp.eq.s32.totalorder %v232_v30, %v1151_v10 }
  0x58   : > { %513 = vmatpush.msra.mxu0 %v494_v33  ;;  %v493_v37 = vadd.f32 %v715_v29, %v428_v34  ;;  %v666_v38 = vsel %vm249_vm8, 1.0, %v991_v15  ;;  %v682_v39 = vsel %vm314_vm9, 1.0, %v991_v15  ;;  %v698_v40 = vsel %vm379_vm10, 1.0, %v991_v15 }
  0x59   : > { %v362_v41 = vadd.f32 %v682_v39, %v666_v38  ;;  %v714_v42 = vsel %vm444_vm11, 1.0, %v991_v15  ;;  %vm248_vm12 = vcmp.eq.s32.totalorder %v231_v31, %v1145_v7  ;;  %vm313_vm13 = vcmp.eq.s32.totalorder %v231_v31, %v1147_v8 }
  0x5a   : > { %514 = vmatpush.msra.mxu0 %v493_v37  ;;  %v665_v43 = vsel %vm248_vm12, 1.0, %v991_v15  ;;  %v681_v44 = vsel %vm313_vm13, 1.0, %v991_v15  ;;  %vm378_vm14 = vcmp.eq.s32.totalorder %v231_v31, %v1149_v9  ;;  %vm443_vm15 = vcmp.eq.s32.totalorder %v231_v31, %v1151_v10 }
  0x5b   : > { %v427_v45 = vadd.f32 %v698_v40, %v362_v41  ;;  %v361_v46 = vadd.f32 %v681_v44, %v665_v43  ;;  %v697_v47 = vsel %vm378_vm14, 1.0, %v991_v15  ;;  %v713_v48 = vsel %vm443_vm15, 1.0, %v991_v15 }
  0x5c   : > { %vm247_vm0 = vcmp.eq.s32.totalorder %v230_v32, %v1145_v7  ;;  %vm312_vm1 = vcmp.eq.s32.totalorder %v230_v32, %v1147_v8  ;;  %vm377_vm2 = vcmp.eq.s32.totalorder %v230_v32, %v1149_v9  ;;  %vm442_vm3 = vcmp.eq.s32.totalorder %v230_v32, %v1151_v10 }
  0x5d   : > { %v492_v49 = vadd.f32 %v714_v42, %v427_v45  ;;  %v426_v50 = vadd.f32 %v697_v47, %v361_v46  ;;  %v664_v51 = vsel %vm247_vm0, 1.0, %v991_v15  ;;  %v680_v52 = vsel %vm312_vm1, 1.0, %v991_v15 }
  0x5e   : > { %v360_v53 = vadd.f32 %v680_v52, %v664_v51  ;;  %v696_v54 = vsel %vm377_vm2, 1.0, %v991_v15  ;;  %v712_v55 = vsel %vm442_vm3, 1.0, %v991_v15  ;;  %vm246_vm4 = vcmp.eq.s32.totalorder %v229_v35, %v1145_v7 }
  0x5f   : > { %515 = vmatpush.msra.mxu0 %v492_v49  ;;  %v491_v56 = vadd.f32 %v713_v48, %v426_v50  ;;  %v663_v57 = vsel %vm246_vm4, 1.0, %v991_v15  ;;  %vm311_vm5 = vcmp.eq.s32.totalorder %v229_v35, %v1147_v8  ;;  %vm376_vm6 = vcmp.eq.s32.totalorder %v229_v35, %v1149_v9 }
  0x60   : > { %v425_v58 = vadd.f32 %v696_v54, %v360_v53  ;;  %v679_v59 = vsel %vm311_vm5, 1.0, %v991_v15  ;;  %v695_v60 = vsel %vm376_vm6, 1.0, %v991_v15  ;;  %vm441_vm7 = vcmp.eq.s32.totalorder %v229_v35, %v1151_v10 }
  0x61   : > { %516 = vmatpush.msra.mxu0 %v491_v56  ;;  %v359_v61 = vadd.f32 %v679_v59, %v663_v57  ;;  %v711_v62 = vsel %vm441_vm7, 1.0, %v991_v15  ;;  %vm245_vm8 = vcmp.eq.s32.totalorder %v228_v36, %v1145_v7  ;;  %vm310_vm9 = vcmp.eq.s32.totalorder %v228_v36, %v1147_v8 }
  0x62   : > { %v490_v63 = vadd.f32 %v712_v55, %v425_v58  ;;  %v662_v0 = vsel %vm245_vm8, 1.0, %v991_v15  ;;  %v678_v1 = vsel %vm310_vm9, 1.0, %v991_v15  ;;  %vm375_vm10 = vcmp.eq.s32.totalorder %v228_v36, %v1149_v9 }
  0x63   : > { %v424_v2 = vadd.f32 %v695_v60, %v359_v61  ;;  %v358_v3 = vadd.f32 %v678_v1, %v662_v0  ;;  %v694_v4 = vsel %vm375_vm10, 1.0, %v991_v15  ;;  %vm440_vm11 = vcmp.eq.s32.totalorder %v228_v36, %v1151_v10 }
  0x64   : > { %517 = vmatpush.msra.mxu0 %v490_v63  ;;  %v710_v6 = vsel %vm440_vm11, 1.0, %v991_v15  ;;  %vm244_vm12 = vcmp.eq.s32.totalorder %v1142_v5, %v1145_v7  ;;  %vm309_vm13 = vcmp.eq.s32.totalorder %v1142_v5, %v1147_v8  ;;  %vm374_vm14 = vcmp.eq.s32.totalorder %v1142_v5, %v1149_v9  ;;  %v504_v9 = vld [vmem:[%s185_s23] sm:$0xff] }
  0x65   : > { %v489_v11 = vadd.f32 %v711_v62, %v424_v2  ;;  %v423_v12 = vadd.f32 %v694_v4, %v358_v3  ;;  %v661_v13 = vsel %vm244_vm12, 1.0, %v991_v15  ;;  %v677_v14 = vsel %vm309_vm13, 1.0, %v991_v15 }
  0x66   : > { %v357_v16 = vadd.f32 %v677_v14, %v661_v13  ;;  %v693_v17 = vsel %vm374_vm14, 1.0, %v991_v15  ;;  %vm439_vm15 = vcmp.eq.s32.totalorder %v1142_v5, %v1151_v10 }
  0x67   : > { %518 = vmatpush.msra.mxu0 %v489_v11  ;;  %v488_v7 = vadd.f32 %v710_v6, %v423_v12  ;;  %v709_v18 = vsel %vm439_vm15, 1.0, %v991_v15 }
  0x68   : > { %v422_v8 = vadd.f32 %v693_v17, %v357_v16 }
  0x69   : > { %519 = vmatpush.msra.mxu0 %v488_v7 }
  0x6a   : > { %v487_v19 = vadd.f32 %v709_v18, %v422_v8 }
  0x6c   : > { %520 = vmatpush.msra.mxu0 %v487_v19 }
  0x6d   : > { %521 = vmatmul.f32.vlgmr.msra.gmra.mxu0 %v504_v9 }
  0xe9   : > { %530 = sbr.rel (%p725_p8) target bundleno = 358 (0x166), region = 44 }
  0xea   : > { %v522_v21 = vpop.f32.mrf.mxu0 }
  0xeb   : > { %v525_v22 = vadd.f32 %v522_v21, %v503_v20 }
  0xed   : > { %526 = vst [vmem:[#allocation2] sm:$0xff] %v525_v22 }
  0xee   : > { %v532_v5 = vld [vmem:[%s1364_s2] sm:$0xff]  ;;  %v992_v10 = vmov 0  }
  0xef   : > { %835 = vset.pattern.permute.xlu0 %v992_v10 }
  0xf0   : > { %535 = vperm.xlu0 %835, %v532_v5  }
  0xf4   : > { %v531_v15 = vld [vmem:[#allocation2] sm:$0xff] }
 0x162   : > { %v536_v23 = vpop.permute.xlu0 %535 }
 0x163   : > { %v538_v24 = vadd.f32 %v536_v23, %v531_v15 }
 0x165   : > { %539 = vst [vmem:[%s212_s5] sm:$0xff] %v538_v24 }
 0x166 PF: > { %s727_s18 = sshll.u32 %s976_s19, 3  ;;  %s553_s9 = sshll.u32 %s212_s5, 4  ;;  %s554_s9 = int_to_ptr.vmem [resolvable:$true] %s553_s9 }
 0x167   : > { %s551_s23 = scalar_lea.hbm %s1365_s3, %s727_s18  ;;  %s541_s27 = scalar_lea.sflag [#allocation5], %s210_s26 }
 0x168   : > { %s555_s11 = sshll.u32 %s551_s23, 4  ;;  %s886_s6 = scalar_lea.hbm %s1365_s3, 16  ;;  %s556_s11 = int_to_ptr.hbm [resolvable:$true] %s555_s11 }
 0x169   : > { %s880_s25 = sshra.s32 %s556_s11, 4  ;;  %s881_s25 = int_to_ptr.hbm [resolvable:$true] %s880_s25 }
 0x16a   : > { %s882_s28 = scalar_lea.hbm %s881_s25, 8  ;;  %p887_p0 = scmp.lt.s32.totalorder %s881_s25, %s1365_s3 }
 0x16b   : > { %p883_p10 = scmp.ne.s32.totalorder %s881_s25, %s882_s28  ;;  %p888_p1 = scmp.lt.s32.totalorder %s886_s6, %s882_s28 }
 0x16d   : > { %p884_p11 = pnand %p883_p10, %p1101_p12  ;;  %p889_p4 = por %p888_p1, %p887_p0 }
 0x16f   : > { %p885_p13 = pneg %p884_p11 }
 0x171   : > { %p890_p5 = pnand %p889_p4, %p885_p13 }
 0x173   : > { %893 = shalt.err (!%p890_p5)
}
 0x174   : > { %732 = dma.vmem_to_hbm [thread:$0]  (%p1101_p12), %s554_s9, 128, %s556_s11, %s541_s27  }
 0x175 PF: > { %p743_p6 = scmp.ge.s32.totalorder %s988_s22, 2  ;;  %s567_s26 = sand.u32 1, %s948_s12  }
 0x176   : > { %s568_s29 = scalar_lea.sflag [#allocation5], %s567_s26 }
 0x177   : > { %p739_p7 = pnand %p743_p6, %p1109_p2 }
 0x179   : > { %p740_p3 = pneg %p739_p7 }
 0x17b   : > { %943 = dma.done.wait (%p740_p3), %s568_s29, 128  }
 0x17c   : > { %945 = vsyncadd (%p740_p3), %s568_s29, 4294967168  ;;  %s19_s22 = sadd.s32 1, %s988_s22   ;;  %s1376_s19 = sld [smem:[#allocation9_spill]] }
 0x17d   : > { %p16_p9 = scmp.ge.s32.totalorder %s19_s22, 6   ;;  %s1377_s8 = sld [smem:[#allocation10_spill]] }
 0x17e   : > { %s1378_s21 = sld [smem:[#allocation11_spill]]  ;;  %s1379_s12 = smov %s952_s13 }
 0x17f   : > { %s1380_s13 = smov %s956_s14  ;;  %s1381_s14 = smov %s1099_s7 }
 0x180   : > { %s1382_s15 = smov %s964_s16  ;;  %s1383_s16 = smov %s968_s17 }
 0x181   : > { %s1384_s17 = smov %s1087_s30  ;;  %s1385_s18 = smov %s980_s20 }
 0x182   :  { %18 = sbr.rel (!%p16_p9) target bundleno = 9 (0x9), region = 88 }
 0x183   : > { %s1386_s20 = smov %s1377_s8 }
 0x187   :  { %574 = vsyncpa [#allocation4], 1 }
 0x188   :  { %576 = vsyncpa [#allocation4 + $0x1], 1 }
 0x189   :  { %577 = vsyncpa [#allocation5], 1 }
 0x18a   :  { %579 = vsyncpa [#allocation5 + $0x1], 1 }

</bundles_post_ra>
